<compile_context>
chip_gen: v7x
topology: tpu7x:2x2x1
jax: 0.10.0
libtpu: 0.0.40
codegen_flags: <defaults>
</compile_context>

<pallas_src>
import jax
import jax.numpy as jnp
from jax.experimental import pallas as pl
from jax.experimental.pallas import tpu as pltpu


def snli_kernel(p_ref, h_ref,
                wp_ref, wh_ref, wf_ref,
                bp_ref, bh_ref, bf_ref,
                out_ref):
    # Encoder for premise:    op = p @ Wp + bp   (TM, D), f32 acc + f32 bias
    op = jnp.dot(p_ref[...], wp_ref[...],
                 preferred_element_type=jnp.float32) + bp_ref[...]
    # Encoder for hypothesis: oh = h @ Wh + bh   (TM, D)
    oh = jnp.dot(h_ref[...], wh_ref[...],
                 preferred_element_type=jnp.float32) + bh_ref[...]
    # final(cat([op, oh], dim=1)) as ONE K = 2*D matmul against unsliced Wf.
    cat = jnp.concatenate([op, oh], axis=-1).astype(wf_ref.dtype)  # (TM, 2D) bf16
    out = jnp.dot(cat, wf_ref[...],
                  preferred_element_type=jnp.float32) + bf_ref[...]
    out_ref[...] = out.astype(out_ref.dtype)


def _pick_batch_tile(batch, requested):
    """Largest (8,128)-friendly tile that divides the batch."""
    for cand in (requested, 256, 128, 64, 32, 16, 8):
        if cand is not None and 0 < cand <= batch and batch % cand == 0:
            return cand
    return batch  # fall back to a single full-batch block


def simple_snli(p, h, params, *, tm=256):
    wp, bp = params["wp"], params["bp"]
    wh, bh = params["wh"], params["bh"]
    wf, bf = params["wf"], params["bf"]

    B, in_dim = p.shape
    D = wp.shape[1]
    TM = _pick_batch_tile(B, tm)
    grid = (B // TM,)

    # bf16 operands for the MXU; f32 biases for the VPU adds.
    p_bf = p.astype(jnp.bfloat16)
    h_bf = h.astype(jnp.bfloat16)
    wp_bf = wp.astype(jnp.bfloat16)
    wh_bf = wh.astype(jnp.bfloat16)
    wf_bf = wf.astype(jnp.bfloat16)
    bp2 = bp.reshape(1, D).astype(jnp.float32)
    bh2 = bh.reshape(1, D).astype(jnp.float32)
    bf2 = bf.reshape(1, D).astype(jnp.float32)

    # Activation tiles walk the batch; weights/biases are VMEM-resident.
    act_spec = lambda cols: pl.BlockSpec((TM, cols), lambda i: (i, 0))
    res_spec = lambda shape: pl.BlockSpec(shape, lambda i: (0, 0))

    # VMEM budget: resident weights + biases + double-buffered p/h/out tiles.
    weight_bytes = (wp_bf.size + wh_bf.size + wf_bf.size) * 2 \
                   + (bp2.size + bh2.size + bf2.size) * 4
    act_bytes = 2 * (2 * TM * in_dim * 2 + TM * D * 4)
    vmem_limit = int(min(weight_bytes + act_bytes + (8 << 20), 96 << 20))

    flops = 2 * B * in_dim * D * 2 + 2 * B * (2 * D) * D
    bytes_accessed = (p_bf.size + h_bf.size) * 2 + weight_bytes + B * D * 4

    return pl.pallas_call(
        snli_kernel,
        out_shape=jax.ShapeDtypeStruct((B, D), jnp.float32),
        grid=grid,
        in_specs=[
            act_spec(in_dim),            # p tile
            act_spec(in_dim),            # h tile
            res_spec(wp_bf.shape),       # Wp  (in_dim, D)
            res_spec(wh_bf.shape),       # Wh  (in_dim, D)
            res_spec(wf_bf.shape),       # Wf  (2D, D)  -- unsliced
            res_spec((1, D)),            # bp
            res_spec((1, D)),            # bh
            res_spec((1, D)),            # bf
        ],
        out_specs=act_spec(D),
        compiler_params=pltpu.CompilerParams(
            dimension_semantics=("parallel",),
            vmem_limit_bytes=vmem_limit),
        cost_estimate=pl.CostEstimate(
            flops=flops, transcendentals=0, bytes_accessed=bytes_accessed),
    )(p_bf, h_bf, wp_bf, wh_bf, wf_bf, bp2, bh2, bf2)


def init_params(key, in_dim, out_dim):
    ks = jax.random.split(key, 6)
    scale_enc = 1.0 / jnp.sqrt(in_dim)
    scale_fin = 1.0 / jnp.sqrt(2 * out_dim)
    return {
        # encoder_p : Linear(in_dim, out_dim), stored (in, out)
        "wp": jax.random.uniform(ks[0], (in_dim, out_dim), jnp.float32,
                                 -scale_enc, scale_enc),
        "bp": jax.random.uniform(ks[1], (out_dim,), jnp.float32,
                                 -scale_enc, scale_enc),
        # encoder_h : Linear(in_dim, out_dim), stored (in, out)
        "wh": jax.random.uniform(ks[2], (in_dim, out_dim), jnp.float32,
                                 -scale_enc, scale_enc),
        "bh": jax.random.uniform(ks[3], (out_dim,), jnp.float32,
                                 -scale_enc, scale_enc),
        # final : Linear(2*out_dim, out_dim), stored (2*out, out)
        "wf": jax.random.uniform(ks[4], (2 * out_dim, out_dim), jnp.float32,
                                 -scale_fin, scale_fin),
        "bf": jax.random.uniform(ks[5], (out_dim,), jnp.float32,
                                 -scale_fin, scale_fin),
    }


def reference_f32(p, h, params):
    op = p @ params["wp"] + params["bp"]
    oh = h @ params["wh"] + params["bh"]
    cat = jnp.concatenate([op, oh], axis=1)
    return cat @ params["wf"] + params["bf"]


def reference_bf16(p, h, params):
    # Mirrors the kernel's precision choices (bf16 MXU inputs, f32 accumulate).
    bf = jnp.bfloat16
    op = jnp.dot(p.astype(bf), params["wp"].astype(bf),
                 preferred_element_type=jnp.float32) + params["bp"]
    oh = jnp.dot(h.astype(bf), params["wh"].astype(bf),
                 preferred_element_type=jnp.float32) + params["bh"]
    cat = jnp.concatenate([op, oh], axis=1).astype(bf)
    return jnp.dot(cat, params["wf"].astype(bf),
                   preferred_element_type=jnp.float32) + params["bf"]


if __name__ == "__main__":
    B, IN_DIM, OUT_DIM = 32, 128, 128   # small, (8,128)-aligned shapes
    key = jax.random.PRNGKey(0)
    kp, kh, kw = jax.random.split(key, 3)

    p = jax.random.normal(kp, (B, IN_DIM), jnp.float32)
    h = jax.random.normal(kh, (B, IN_DIM), jnp.float32)
    params = init_params(kw, IN_DIM, OUT_DIM)

    # tm=8 so the small test exercises multiple grid steps (grid=(4,)).
    out = simple_snli(p, h, params, tm=8)
    out = jax.block_until_ready(out)

    assert out.shape == (B, OUT_DIM)
    assert bool(jnp.all(jnp.isfinite(out))), "non-finite output"

    # Tight check against a reference with identical bf16/f32 precision.
    ref_bf = reference_bf16(p, h, params)
    assert jnp.allclose(out, ref_bf, atol=1e-2, rtol=1e-2), \
        "mismatch vs bf16-precision reference"

    # Loose check against the pure-f32 PyTorch-equivalent math.
    ref_f32 = reference_f32(p, h, params)
    assert jnp.allclose(out, ref_f32, atol=5e-2, rtol=5e-2), \
        "mismatch vs f32 reference"

    print("KERNEL_OK")
</pallas_src>

<mosaic_0001>
module attributes {stable_mosaic.version = 11 : i64} {
  func.func @snli_kernel(%arg0: i32, %arg1: memref<8x128xbf16, #tpu.memory_space<vmem>>, %arg2: memref<8x128xbf16, #tpu.memory_space<vmem>>, %arg3: memref<128x128xbf16, #tpu.memory_space<vmem>>, %arg4: memref<128x128xbf16, #tpu.memory_space<vmem>>, %arg5: memref<256x128xbf16, #tpu.memory_space<vmem>>, %arg6: memref<1x128xf32, #tpu.memory_space<vmem>>, %arg7: memref<1x128xf32, #tpu.memory_space<vmem>>, %arg8: memref<1x128xf32, #tpu.memory_space<vmem>>, %arg9: memref<8x128xf32, #tpu.memory_space<vmem>>) attributes {dimension_semantics = [#tpu.dimension_semantics<parallel>], iteration_bounds = array<i64: 4>, scalar_prefetch = 0 : i64, scratch_operands = 0 : i64, tpu.core_type = #tpu.core_type<tc>, window_params = [{transform_indices = @transform_0, window_bounds = array<i64: 8, 128>}, {transform_indices = @transform_1, window_bounds = array<i64: 8, 128>}, {pipeline_mode = #tpu.pipeline_mode<synchronous>, transform_indices = @transform_2, window_bounds = array<i64: 128, 128>}, {pipeline_mode = #tpu.pipeline_mode<synchronous>, transform_indices = @transform_3, window_bounds = array<i64: 128, 128>}, {pipeline_mode = #tpu.pipeline_mode<synchronous>, transform_indices = @transform_4, window_bounds = array<i64: 256, 128>}, {pipeline_mode = #tpu.pipeline_mode<synchronous>, transform_indices = @transform_5, window_bounds = array<i64: 1, 128>}, {pipeline_mode = #tpu.pipeline_mode<synchronous>, transform_indices = @transform_6, window_bounds = array<i64: 1, 128>}, {pipeline_mode = #tpu.pipeline_mode<synchronous>, transform_indices = @transform_7, window_bounds = array<i64: 1, 128>}, {transform_indices = @transform_8, window_bounds = array<i64: 8, 128>}]} {
    %c0 = arith.constant 0 : index
    %c0_0 = arith.constant 0 : index
    %0 = vector.load %arg1[%c0, %c0_0] : memref<8x128xbf16, #tpu.memory_space<vmem>>, vector<8x128xbf16>
    %c0_1 = arith.constant 0 : index
    %c0_2 = arith.constant 0 : index
    %1 = vector.load %arg3[%c0_1, %c0_2] : memref<128x128xbf16, #tpu.memory_space<vmem>>, vector<128x128xbf16>
    %cst = arith.constant dense<0.000000e+00> : vector<8x128xf32>
    %2 = tpu.matmul %0, %1, %cst {dimension_numbers = #tpu.dot_dimension_numbers<[1], [0], [0], [1], [0, 0, 1, 1], [], []>} : vector<8x128xbf16>, vector<128x128xbf16>, vector<8x128xf32> -> vector<8x128xf32>
    %c0_3 = arith.constant 0 : index
    %c0_4 = arith.constant 0 : index
    %3 = vector.load %arg6[%c0_3, %c0_4] : memref<1x128xf32, #tpu.memory_space<vmem>>, vector<1x128xf32>
    %4 = vector.broadcast %3 : vector<1x128xf32> to vector<8x128xf32>
    %5 = arith.addf %2, %4 : vector<8x128xf32>
    %c0_5 = arith.constant 0 : index
    %c0_6 = arith.constant 0 : index
    %6 = vector.load %arg2[%c0_5, %c0_6] : memref<8x128xbf16, #tpu.memory_space<vmem>>, vector<8x128xbf16>
    %c0_7 = arith.constant 0 : index
    %c0_8 = arith.constant 0 : index
    %7 = vector.load %arg4[%c0_7, %c0_8] : memref<128x128xbf16, #tpu.memory_space<vmem>>, vector<128x128xbf16>
    %cst_9 = arith.constant dense<0.000000e+00> : vector<8x128xf32>
    %8 = tpu.matmul %6, %7, %cst_9 {dimension_numbers = #tpu.dot_dimension_numbers<[1], [0], [0], [1], [0, 0, 1, 1], [], []>} : vector<8x128xbf16>, vector<128x128xbf16>, vector<8x128xf32> -> vector<8x128xf32>
    %c0_10 = arith.constant 0 : index
    %c0_11 = arith.constant 0 : index
    %9 = vector.load %arg7[%c0_10, %c0_11] : memref<1x128xf32, #tpu.memory_space<vmem>>, vector<1x128xf32>
    %10 = vector.broadcast %9 : vector<1x128xf32> to vector<8x128xf32>
    %11 = arith.addf %8, %10 : vector<8x128xf32>
    %12 = tpu.concatenate %5, %11 in 1 : vector<8x128xf32>, vector<8x128xf32> -> vector<8x256xf32>
    %13 = arith.truncf %12 : vector<8x256xf32> to vector<8x256xbf16>
    %c0_12 = arith.constant 0 : index
    %c0_13 = arith.constant 0 : index
    %14 = vector.load %arg5[%c0_12, %c0_13] : memref<256x128xbf16, #tpu.memory_space<vmem>>, vector<256x128xbf16>
    %cst_14 = arith.constant dense<0.000000e+00> : vector<8x128xf32>
    %15 = tpu.matmul %13, %14, %cst_14 {dimension_numbers = #tpu.dot_dimension_numbers<[1], [0], [0], [1], [0, 0, 1, 1], [], []>} : vector<8x256xbf16>, vector<256x128xbf16>, vector<8x128xf32> -> vector<8x128xf32>
    %c0_15 = arith.constant 0 : index
    %c0_16 = arith.constant 0 : index
    %16 = vector.load %arg8[%c0_15, %c0_16] : memref<1x128xf32, #tpu.memory_space<vmem>>, vector<1x128xf32>
    %17 = vector.broadcast %16 : vector<1x128xf32> to vector<8x128xf32>
    %18 = arith.addf %15, %17 : vector<8x128xf32>
    %c0_17 = arith.constant 0 : index
    %c0_18 = arith.constant 0 : index
    %19 = vector.load %arg9[%c0_17, %c0_18] : memref<8x128xf32, #tpu.memory_space<vmem>>, vector<8x128xf32>
    tpu.vector_store %arg9[%c0_17, %c0_18], %18 {strides = array<i32>} : memref<8x128xf32, #tpu.memory_space<vmem>>, vector<8x128xf32>,
    return
  }
  func.func @transform_0(%arg0: i32) -> (i32, i32) {
    %c0_i32 = arith.constant 0 : i32
    %c0_i32_0 = arith.constant 0 : i32
    return %arg0, %c0_i32 : i32, i32
  }
  func.func @transform_1(%arg0: i32) -> (i32, i32) {
    %c0_i32 = arith.constant 0 : i32
    %c0_i32_0 = arith.constant 0 : i32
    return %arg0, %c0_i32 : i32, i32
  }
  func.func @transform_2(%arg0: i32) -> (i32, i32) {
    %c0_i32 = arith.constant 0 : i32
    %c0_i32_0 = arith.constant 0 : i32
    %c0_i32_1 = arith.constant 0 : i32
    return %c0_i32, %c0_i32_0 : i32, i32
  }
  func.func @transform_3(%arg0: i32) -> (i32, i32) {
    %c0_i32 = arith.constant 0 : i32
    %c0_i32_0 = arith.constant 0 : i32
    %c0_i32_1 = arith.constant 0 : i32
    return %c0_i32, %c0_i32_0 : i32, i32
  }
  func.func @transform_4(%arg0: i32) -> (i32, i32) {
    %c0_i32 = arith.constant 0 : i32
    %c0_i32_0 = arith.constant 0 : i32
    %c0_i32_1 = arith.constant 0 : i32
    return %c0_i32, %c0_i32_0 : i32, i32
  }
  func.func @transform_5(%arg0: i32) -> (i32, i32) {
    %c0_i32 = arith.constant 0 : i32
    %c0_i32_0 = arith.constant 0 : i32
    %c0_i32_1 = arith.constant 0 : i32
    return %c0_i32, %c0_i32_0 : i32, i32
  }
  func.func @transform_6(%arg0: i32) -> (i32, i32) {
    %c0_i32 = arith.constant 0 : i32
    %c0_i32_0 = arith.constant 0 : i32
    %c0_i32_1 = arith.constant 0 : i32
    return %c0_i32, %c0_i32_0 : i32, i32
  }
  func.func @transform_7(%arg0: i32) -> (i32, i32) {
    %c0_i32 = arith.constant 0 : i32
    %c0_i32_0 = arith.constant 0 : i32
    %c0_i32_1 = arith.constant 0 : i32
    return %c0_i32, %c0_i32_0 : i32, i32
  }
  func.func @transform_8(%arg0: i32) -> (i32, i32) {
    %c0_i32 = arith.constant 0 : i32
    %c0_i32_0 = arith.constant 0 : i32
    return %arg0, %c0_i32 : i32, i32
  }
}

</mosaic_0001>

<bundles_post_ra>
// kernel: tpu_custom_call.1
= control target key start
LH: loop header
LB: loop body
LE: loop exit
PB: predicated region body
PF: predicated region fallthrough
CT: control target
= control target key end

     0   :  { %s1783_s0 = inlined_call_operand.hbm [shape: bf16[32,128], index: 0, kind: input, shape index: {}]   ;;  %s1784_s1 = inlined_call_operand.hbm [shape: bf16[32,128], index: 1, kind: input, shape index: {}]   ;;  %s1785_s2 = inlined_call_operand.hbm [shape: bf16[128,128], index: 2, kind: input, shape index: {}]   ;;  %s1786_s3 = inlined_call_operand.hbm [shape: bf16[128,128], index: 3, kind: input, shape index: {}]   ;;  %s1787_s4 = inlined_call_operand.hbm [shape: bf16[256,128], index: 4, kind: input, shape index: {}]   ;;  %s1788_s5 = inlined_call_operand.vmem [shape: f32[1,128], index: 5, kind: input, shape index: {}]   ;;  %s1789_s6 = inlined_call_operand.vmem [shape: f32[1,128], index: 6, kind: input, shape index: {}]   ;;  %s1790_s7 = inlined_call_operand.vmem [shape: f32[1,128], index: 7, kind: input, shape index: {}]   ;;  %s1791_s8 = inlined_call_operand.hbm [shape: f32[32,128], index: 8, kind: output, shape index: {}]  }
   0x1   :  { %1798 = sst [smem:[#allocation19_spill]] %s1785_s2 }
   0x2   :  { %1799 = sst [smem:[#allocation20_spill]] %s1786_s3 }
   0x3   :  { %1800 = sst [smem:[#allocation21_spill]] %s1787_s4 }
   0x4   :  { %13 = vsyncpa [#allocation3], 0 }
   0x5   :  { %15 = vsyncpa [#allocation3 + $0x1], 0 }
   0x6   :  { %16 = vsyncpa [#allocation6], 0 }
   0x7   :  { %18 = vsyncpa [#allocation6 + $0x1], 0 }
   0x8   :  { %19 = vsyncpa [#allocation9], 0 }
   0x9   :  { %20 = vsyncpa [#allocation4], 0 }
   0xa   :  { %22 = vsyncpa [#allocation4 + $0x1], 0  ;;  %s1472_s27 = smov 0   ;;  %s1474_s28 = smov 0  }
   0xb   :  { %s1476_s29 = smov 0   ;;  %s1478_s30 = smov 0  }
   0xc LB: > { %1801 = sst [smem:[#allocation17_spill]] %s1403_s27  ;;  %s1493_s9 = sadd.s32 4294967295, %s1415_s30   ;;  %s1415_s30 = sphi %s1478_s30, %s1827_s30   ;;  %s1411_s29 = sphi %s1476_s29, %s1826_s29   ;;  %s1407_s28 = sphi %s1474_s28, %s1825_s28   ;;  %s1403_s27 = sphi %s1472_s27, %s1824_s27  }
   0xd   : > { %s939_s10 = sadd.s32 4294967294, %s1415_s30   ;;  %p48_p0 = scmp.ne.s32.totalorder %s1407_s28, %s1403_s27 }
   0xe   : > { %p1792_p1 = scmp.eq.s32.totalorder %s1493_s9, 0  ;;  %p230_p3 = scmp.eq.s32.totalorder %s939_s10, 3 }
   0xf   : > { %p940_p5 = scmp.ge.s32.totalorder %s1415_s30, 1  ;;  %p237_p7 = scmp.lt.s32.totalorder %s1415_s30, 5 }
  0x10   : > { %p1502_p4 = por %p1792_p1, %p48_p0  ;;  %p1507_p6 = por %p230_p3, %p48_p0 }
  0x11   : > { %p1512_p8 = pnand %p940_p5, %p237_p7  ;;  %s1417_s14 = smov [#allocation7]  }
  0x12   : > { %s1802_s11 = scalar_select %p1502_p4, 1, 0 }
  0x13   : > { %s1803_s12 = scalar_select %p1507_p6, 1, 0 }
  0x14   : > { %s1805_s13 = scalar_select %p1512_p8, 1, 0 }
  0x15   : > { %1804 = sst [smem:[#allocation18_spill]] %s1803_s12  ;;  %s249_s15 = sshll.u32 %s1417_s14, 4  ;;  %s1516_s15 = int_to_ptr.vmem [resolvable:$true] %s249_s15 }
  0x16   : > { %p1093_p9 = pneg %p1512_p8  ;;  %s1418_s17 = smov [#allocation8]  }
  0x17   : > { %s262_s18 = sshll.u32 %s1418_s17, 4  ;;  %s1419_s19 = smov [#allocation10]   ;;  %s1526_s18 = int_to_ptr.vmem [resolvable:$true] %s262_s18 }
  0x18   : > { %p1522_p10 = pnand %p1093_p9, %p1792_p1  ;;  %s1528_s20 = sshll.u32 %s1419_s19, 4  ;;  %s276_s20 = int_to_ptr.vmem [resolvable:$true] %s1528_s20 }
  0x19   : > { %s1807_s2 = sld [smem:[#allocation19_spill]] }
  0x1a   : > { %p1538_p12 = pneg %p1522_p10 }
  0x1f   : > { %s1193_s23 = scalar_lea.hbm %s1807_s2, 1024 }
  0x20   : > { %p1194_p11 = scmp.ne.s32.totalorder %s1807_s2, %s1193_s23  ;;  %p1200_p3 = scmp.lt.u32.totalorder %s1193_s23, %s1807_s2 }
  0x22   : > { %p1196_p13 = pnand %p1538_p12, %p1194_p11 }
  0x24   : > { %p1197_p0 = pneg %p1196_p13 }
  0x26   : > { %p1202_p5 = pnand %p1200_p3, %p1197_p0 }
  0x28   : > { %1205 = shalt.err (!%p1202_p5)
}
  0x29   : > { %s1206_s17 = scalar_lea.vmem %s1516_s15, 1024  ;;  %p1214_p2 = scmp.lt.s32.totalorder %s1516_s15, %s1516_s15 }
  0x2a   : > { %p1207_p7 = scmp.ne.s32.totalorder %s1516_s15, %s1206_s17  ;;  %p1215_p6 = scmp.lt.s32.totalorder %s1206_s17, %s1206_s17 }
  0x2c   : > { %p1209_p9 = pnand %p1207_p7, %p1538_p12  ;;  %p1216_p11 = por %p1215_p6, %p1214_p2 }
  0x2e   : > { %p1210_p1 = pneg %p1209_p9 }
  0x30   : > { %p1217_p13 = pnand %p1216_p11, %p1210_p1 }
  0x32   : > { %1220 = shalt.err (!%p1217_p13)
}
  0x33   : > { %s1420_s19 = smov 64   ;;  %s1421_s21 = smov 4  }
  0x34   : > { %1096 = dma.hbm_to_vmem [thread:$0]  (!%p1522_p10), %s1807_s2, 1024, %s1516_s15, [#allocation6], %s1420_s19, %s1420_s19, %s1421_s21  }
  0x35   : > { %s1809_s3 = sld [smem:[#allocation20_spill]] }
  0x3b   : > { %s1221_s10 = scalar_lea.hbm %s1809_s3, 1024 }
  0x3c   : > { %p1222_p1 = scmp.ne.s32.totalorder %s1809_s3, %s1221_s10  ;;  %p1228_p0 = scmp.lt.u32.totalorder %s1221_s10, %s1809_s3 }
  0x3e   : > { %p1224_p2 = pnand %p1222_p1, %p1538_p12 }
  0x40   : > { %p1225_p6 = pneg %p1224_p2 }
  0x42   : > { %p1230_p3 = pnand %p1228_p0, %p1225_p6 }
  0x44   : > { %1233 = shalt.err (!%p1230_p3)
}
  0x45   : > { %s1234_s15 = scalar_lea.vmem %s1526_s18, 1024  ;;  %p1242_p11 = scmp.lt.s32.totalorder %s1526_s18, %s1526_s18 }
  0x46   : > { %p1235_p5 = scmp.ne.s32.totalorder %s1526_s18, %s1234_s15  ;;  %p1243_p13 = scmp.lt.s32.totalorder %s1234_s15, %s1234_s15 }
  0x48   : > { %p1237_p7 = pnand %p1235_p5, %p1538_p12  ;;  %p1244_p1 = por %p1243_p13, %p1242_p11 }
  0x4a   : > { %p1238_p9 = pneg %p1237_p7 }
  0x4c   : > { %p1245_p2 = pnand %p1244_p1, %p1238_p9 }
  0x4e   : > { %1248 = shalt.err (!%p1245_p2)
}
  0x4f   : > { %1099 = dma.hbm_to_vmem [thread:$0]  (!%p1522_p10), %s1809_s3, 1024, %s1526_s18, [#allocation9], %s1420_s19, %s1420_s19, %s1421_s21  }
  0x50   : > { %s1810_s4 = sld [smem:[#allocation21_spill]] }
  0x56   : > { %s1249_s24 = scalar_lea.hbm %s1810_s4, 2048 }
  0x57   : > { %p1250_p6 = scmp.ne.s32.totalorder %s1810_s4, %s1249_s24  ;;  %p1256_p5 = scmp.lt.u32.totalorder %s1249_s24, %s1810_s4 }
  0x59   : > { %p1252_p0 = pnand %p1250_p6, %p1538_p12 }
  0x5b   : > { %p1253_p3 = pneg %p1252_p0 }
  0x5d   : > { %p1258_p7 = pnand %p1256_p5, %p1253_p3 }
  0x5f   : > { %1261 = shalt.err (!%p1258_p7)
}
  0x60   : > { %s1262_s15 = scalar_lea.vmem %s276_s20, 2048  ;;  %p1270_p1 = scmp.lt.s32.totalorder %s276_s20, %s276_s20 }
  0x61   : > { %p1263_p9 = scmp.ne.s32.totalorder %s276_s20, %s1262_s15  ;;  %p1271_p2 = scmp.lt.s32.totalorder %s1262_s15, %s1262_s15 }
  0x63   : > { %p1265_p11 = pnand %p1263_p9, %p1538_p12  ;;  %p1272_p4 = por %p1271_p2, %p1270_p1 }
  0x65   : > { %p1266_p13 = pneg %p1265_p11 }
  0x67   : > { %p1273_p8 = pnand %p1272_p4, %p1266_p13 }
  0x69   : > { %1276 = shalt.err (!%p1273_p8)
}
  0x6a   : > { %1102 = dma.hbm_to_vmem [thread:$0]  (!%p1522_p10), %s1810_s4, 2048, %s276_s20, [#allocation9], %s1420_s19, %s1420_s19, %s1421_s21  }
  0x6b   : > { %s1611_s26 = sadd.s32 1, %s1415_s30   ;;  %s35_s12 = sadd.s32 1, %s1411_s29 }
  0x6c   : > { %s32_s16 = ssub.s32 %s1415_s30, %s1611_s26  ;;  %p42_p8 = scmp.ne.s32.totalorder %s1411_s29, %s1407_s28 }
  0x6d   : > { %p33_p4 = scmp.eq.s32.totalorder %s32_s16, 0  ;;  %p43_p12 = scmp.eq.s32.totalorder %s1415_s30, 0 }
  0x6e   : > { %p1117_p6 = scmp.lt.s32.totalorder %s1415_s30, 4  ;;  %p1811_p3 = scmp.eq.s32.totalorder %s1493_s9, 3 }
  0x6f   : > { %s1621_s22 = scalar_select %p33_p4, %s1411_s29, %s35_s12  }
  0x70   : > { %p44_p0 = por %p43_p12, %p42_p8  ;;  %p1625_p5 = por %p1811_p3, %p42_p8 }
  0x71   : > { %s298_s24 = sand.u32 1, %s1411_s29   ;;  %s946_s25 = sshll.u32 %s1415_s30, 6 }
  0x72   : > { %s1812_s23 = scalar_select %p1625_p5, 1, 0 }
  0x73   : > { %s1631_s20 = sshll.u32 %s298_s24, 2  ;;  %s1636_s10 = scalar_lea.hbm %s1783_s0, %s946_s25 }
  0x74   : > { %s302_s14 = scalar_lea.vmem [#allocation2], %s1631_s20  ;;  %p1639_p10 = pnand %p1117_p6, %p44_p0 }
  0x75   : > { %s309_s17 = sshll.u32 %s302_s14, 4  ;;  %s1648_s16 = scalar_lea.hbm %s1784_s1, %s946_s25  ;;  %s1643_s17 = int_to_ptr.vmem [resolvable:$true] %s309_s17 }
  0x76   : > { %s299_s12 = scalar_lea.sflag [#allocation3], %s298_s24  ;;  %s1277_s19 = scalar_lea.hbm %s1636_s10, 64 }
  0x77   : > { %p1278_p7 = scmp.ne.s32.totalorder %s1636_s10, %s1277_s19  ;;  %p1279_p9 = pneg %p1639_p10 }
  0x78   : > { %s1282_s2 = scalar_lea.hbm %s1783_s0, 256  ;;  %p1283_p1 = scmp.lt.u32.totalorder %s1636_s10, %s1783_s0 }
  0x79   : > { %p1280_p11 = pnand %p1279_p9, %p1278_p7  ;;  %p1284_p2 = scmp.lt.u32.totalorder %s1282_s2, %s1277_s19 }
  0x7a   : > { %p1286_p8 = scmp.lt.u32.totalorder %s1277_s19, %s1636_s10 }
  0x7b   : > { %p1281_p13 = pneg %p1280_p11  ;;  %p1285_p4 = por %p1284_p2, %p1283_p1 }
  0x7d   : > { %p1287_p12 = por %p1286_p8, %p1285_p4 }
  0x7f   : > { %p1288_p6 = pnand %p1287_p12, %p1281_p13 }
  0x81   : > { %1291 = shalt.err (!%p1288_p6)
}
  0x82   : > { %s1292_s24 = scalar_lea.vmem %s1643_s17, 64  ;;  %s1422_s25 = smov [#allocation2]  }
  0x83   : > { %p1293_p0 = scmp.ne.s32.totalorder %s1643_s17, %s1292_s24  ;;  %s1297_s18 = sshll.u32 %s1422_s25, 4  ;;  %s1298_s18 = int_to_ptr.vmem [resolvable:$false] %s1297_s18 }
  0x84   : > { %s1299_s3 = scalar_lea.vmem %s1298_s18, 128  ;;  %p1300_p11 = scmp.lt.s32.totalorder %s1643_s17, %s1298_s18 }
  0x85   : > { %p1295_p3 = pnand %p1293_p0, %p1279_p9  ;;  %p1301_p1 = scmp.lt.s32.totalorder %s1299_s3, %s1292_s24 }
  0x87   : > { %p1296_p7 = pneg %p1295_p3  ;;  %p1302_p2 = por %p1301_p1, %p1300_p11 }
  0x89   : > { %p1303_p4 = pnand %p1302_p2, %p1296_p7 }
  0x8b   : > { %1306 = shalt.err (!%p1303_p4)
}
  0x8c   : > { %1106 = dma.hbm_to_vmem [thread:$0]  (!%p1639_p10), %s1636_s10, 64, %s1643_s17, %s299_s12  }
  0x8d   : > { %s316_s2 = sand.u32 1, %s1415_s30   ;;  %s320_s4 = scalar_lea.vmem [#allocation5], %s1631_s20 }
  0x8e   : > { %s327_s27 = sshll.u32 %s320_s4, 4  ;;  %s317_s19 = scalar_lea.sflag [#allocation6], %s316_s2  ;;  %s328_s27 = int_to_ptr.vmem [resolvable:$true] %s327_s27 }
  0x8f   : > { %s1307_s21 = scalar_lea.hbm %s1648_s16, 64  ;;  %s1312_s25 = scalar_lea.hbm %s1784_s1, 256 }
  0x90   : > { %p1308_p13 = scmp.ne.s32.totalorder %s1648_s16, %s1307_s21  ;;  %p1313_p6 = scmp.lt.u32.totalorder %s1648_s16, %s1784_s1 }
  0x91   : > { %p1314_p0 = scmp.lt.u32.totalorder %s1312_s25, %s1307_s21  ;;  %p1316_p7 = scmp.lt.u32.totalorder %s1307_s21, %s1648_s16 }
  0x92   : > { %p1310_p8 = pnand %p1308_p13, %p1279_p9 }
  0x93   : > { %p1315_p3 = por %p1314_p0, %p1313_p6 }
  0x94   : > { %p1311_p12 = pneg %p1310_p8 }
  0x95   : > { %p1317_p11 = por %p1316_p7, %p1315_p3 }
  0x97   : > { %p1318_p1 = pnand %p1317_p11, %p1311_p12 }
  0x99   : > { %1321 = shalt.err (!%p1318_p1)
}
  0x9a   : > { %s1322_s20 = scalar_lea.vmem %s328_s27, 64  ;;  %s1423_s10 = smov [#allocation5]  }
  0x9b   : > { %p1323_p2 = scmp.ne.s32.totalorder %s328_s27, %s1322_s20  ;;  %s1327_s17 = sshll.u32 %s1423_s10, 4  ;;  %s1328_s17 = int_to_ptr.vmem [resolvable:$false] %s1327_s17 }
  0x9c   : > { %s1329_s12 = scalar_lea.vmem %s1328_s17, 128  ;;  %p1330_p8 = scmp.lt.s32.totalorder %s328_s27, %s1328_s17 }
  0x9d   : > { %p1325_p4 = pnand %p1323_p2, %p1279_p9  ;;  %p1331_p5 = scmp.lt.s32.totalorder %s1329_s12, %s1322_s20 }
  0x9f   : > { %p1326_p13 = pneg %p1325_p4  ;;  %p1332_p0 = por %p1331_p5, %p1330_p8 }
  0xa1   : > { %p1333_p6 = pnand %p1332_p0, %p1326_p13 }
  0xa3   : > { %1336 = shalt.err (!%p1333_p6)
}
  0xa4   : > { %1109 = dma.hbm_to_vmem [thread:$0]  (!%p1639_p10), %s1648_s16, 64, %s328_s27, %s317_s19  }
  0xa5   : > { %p1814_p12 = scmp.ne.s32.totalorder %s1805_s13, 0 }
  0xa6   : > { %s1699_s2 = sand.u32 (!%p1814_p12), 1, %s1407_s28   ;;  %p1815_p5 = scmp.ne.s32.totalorder (!%p1814_p12), %s1802_s11, 0 }
  0xa7   : > { %336 = sbr.rel (%p1814_p12) target bundleno = 667 (0x29b), region = 52  ;;  %s950_s4 = sshll.u32 (!%p1814_p12), %s1699_s2, 2 }
  0xa8   : > { %s339_s21 = scalar_lea.sflag (!%p1814_p12), [#allocation3], %s1699_s2  ;;  %s1703_s14 = scalar_lea.vmem (!%p1814_p12), [#allocation2], %s950_s4 }
  0xae   : > { %1382 = dma.done.wait (%p1815_p5), %s339_s21, 64  }
  0xaf   : > { %1384 = vsyncadd (%p1815_p5), %s339_s21, 4294967232  ;;  %s347_s15 = sand.u32 1, %s1493_s9   ;;  %s1710_s16 = scalar_lea.vmem [#allocation5], %s950_s4 }
  0xb0   : > { %s348_s13 = scalar_lea.sflag [#allocation6], %s347_s15 }
  0xb1   : > { %1386 = dma.done.wait (%p1815_p5), %s348_s13, 64  }
  0xb2   : > { %1388 = vsyncadd (%p1815_p5), %s348_s13, 4294967232  ;;  %p1816_p10 = scmp.eq.s32.totalorder %s1493_s9, 0 }
  0xb4   : > { %1390 = dma.done.wait (%p1816_p10), [#allocation6], 1024   ;;  %p1817_p9 = pmov %p1816_p10 }
  0xb6   : > { %1392 = vsyncadd (%p1817_p9), [#allocation6], 4294966272  ;;  %p1818_p3 = pmov %p1817_p9 }
  0xb8   : > { %1394 = dma.done.wait (%p1818_p3), [#allocation9], 3072   ;;  %p1819_p7 = pmov %p1818_p3 }
  0xb9   : > { %v1424_v0 = vmov 0.0   ;;  %vm1425_vm0 = vmmov 0   ;;  %v1161_v1 = vld [vmem:[#allocation7] sm:$0xff]   ;;  %v1163_v3 = vld [vmem:[#allocation7 + $0x8] sm:$0xff]   ;;  %v1165_v5 = vld [vmem:[#allocation7 + $0x10] sm:$0xff]   ;;  %s955_s25 = sshll.u32 %s1699_s2, 3 }
  0xba   : > { %1396 = vsyncadd (%p1819_p7), [#allocation9], 4294964224  ;;  %1035 = vmatprep.subr.bf16.mxu0 %v1424_v0  ;;  %1055 = vmatprep.subr.bf16.mxu1 %v1424_v0  ;;  %v1162_v2 = vld [vmem:[#allocation8] sm:$0xff]   ;;  %v1164_v4 = vld [vmem:[#allocation8 + $0x8] sm:$0xff]   ;;  %s992_s20 = sshll.u32 %s1493_s9, 7  ;;  %s400_s10 = scalar_lea.vmem [#allocation11], %s955_s25 }
  0xbb   : > { %1051 = vmatprep.mubr.msk.bf16.mxu0 %vm1425_vm0, %v1424_v0  ;;  %1071 = vmatprep.mubr.msk.bf16.mxu1 %vm1425_vm0, %v1424_v0  ;;  %v1166_v6 = vld [vmem:[#allocation8 + $0x10] sm:$0xff]   ;;  %v1167_v7 = vld [vmem:[#allocation7 + $0x18] sm:$0xff]   ;;  %v1169_v9 = vld [vmem:[#allocation7 + $0x20] sm:$0xff]   ;;  %s818_s17 = sshll.u32 %s400_s10, 4  ;;  %s1740_s21 = scalar_lea.hbm %s1791_s8, %s992_s20  ;;  %s1742_s17 = int_to_ptr.vmem [resolvable:$true] %s818_s17 }
  0xbc   : > { %1036 = vmatpush3.bf16.msra.mxu0 %v1161_v1  ;;  %1056 = vmatpush3.bf16.msra.mxu1 %v1162_v2  ;;  %v1168_v8 = vld [vmem:[#allocation8 + $0x18] sm:$0xff]   ;;  %v1170_v10 = vld [vmem:[#allocation8 + $0x20] sm:$0xff]   ;;  %v1171_v11 = vld [vmem:[#allocation7 + $0x28] sm:$0xff]   ;;  %s1337_s15 = scalar_lea.vmem %s1742_s17, 128  ;;  %p1820_p1 = scmp.ne.s32.totalorder %s1812_s23, 0 }
  0xbd   : > { %1037 = vmatprep.subr.bf16.mxu0 %v1424_v0  ;;  %1057 = vmatprep.subr.bf16.mxu1 %v1424_v0  ;;  %v1172_v12 = vld [vmem:[#allocation8 + $0x28] sm:$0xff]   ;;  %v1173_v13 = vld [vmem:[#allocation7 + $0x30] sm:$0xff]   ;;  %v1175_v15 = vld [vmem:[#allocation7 + $0x38] sm:$0xff]   ;;  %p1338_p11 = scmp.ne.s32.totalorder %s1742_s17, %s1337_s15  ;;  %s1426_s9 = smov [#allocation11]  }
  0xbe   : > { %v1174_v14 = vld [vmem:[#allocation8 + $0x30] sm:$0xff]   ;;  %v1176_v16 = vld [vmem:[#allocation8 + $0x38] sm:$0xff]   ;;  %v1177_v17 = vld [vmem:[#allocation10 + $0x40] sm:$0xff]   ;;  %s1341_s13 = sshll.u32 %s1426_s9, 4  ;;  %s1342_s13 = int_to_ptr.vmem [resolvable:$false] %s1341_s13 }
  0xbf   : > { %v402_v18 = vld [vmem:[%s1703_s14] sm:$0xf]  ;;  %v514_v19 = vld [vmem:[%s1710_s16] sm:$0xf]  ;;  %v1178_v20 = vld [vmem:[#allocation10] sm:$0xff]   ;;  %s805_s14 = scalar_lea.sflag [#allocation4], %s1699_s2  ;;  %p1339_p2 = pnand %p1338_p11, %p1820_p1 }
  0xc0   : > { %1038 = vmatpush3.bf16.msra.mxu0 %v1163_v3  ;;  %1058 = vmatpush3.bf16.msra.mxu1 %v1164_v4  ;;  %v1179_v21 = vld [vmem:[#allocation10 + $0x48] sm:$0xff]   ;;  %v1181_v23 = vld [vmem:[#allocation10 + $0x50] sm:$0xff]   ;;  %v1183_v25 = vld [vmem:[#allocation10 + $0x58] sm:$0xff]   ;;  %s1343_s16 = scalar_lea.vmem %s1342_s13, 256  ;;  %p1344_p13 = scmp.lt.s32.totalorder %s1742_s17, %s1342_s13 }
  0xc1   : > { %1039 = vmatprep.subr.bf16.mxu0 %v1424_v0  ;;  %1059 = vmatprep.subr.bf16.mxu1 %v1424_v0  ;;  %v1180_v22 = vld [vmem:[#allocation10 + $0x8] sm:$0xff]   ;;  %v1182_v24 = vld [vmem:[#allocation10 + $0x10] sm:$0xff]   ;;  %v1184_v26 = vld [vmem:[#allocation10 + $0x18] sm:$0xff]   ;;  %p1340_p4 = pneg %p1339_p2  ;;  %p1345_p8 = scmp.lt.s32.totalorder %s1343_s16, %s1337_s15 }
  0xc2   : > { %v1185_v27 = vld [vmem:[#allocation10 + $0x60] sm:$0xff]   ;;  %v1187_v29 = vld [vmem:[#allocation10 + $0x68] sm:$0xff]   ;;  %v1189_v31 = vld [vmem:[#allocation10 + $0x70] sm:$0xff]  }
  0xc3   : > { %v1186_v28 = vld [vmem:[#allocation10 + $0x20] sm:$0xff]   ;;  %v1188_v30 = vld [vmem:[#allocation10 + $0x28] sm:$0xff]   ;;  %v1190_v32 = vld [vmem:[#allocation10 + $0x30] sm:$0xff]   ;;  %p1346_p0 = por %p1345_p8, %p1344_p13 }
  0xc4   : > { %1040 = vmatpush3.bf16.msra.mxu0 %v1165_v5  ;;  %1060 = vmatpush3.bf16.msra.mxu1 %v1166_v6  ;;  %v1191_v33 = vld [vmem:[#allocation10 + $0x78] sm:$0xff]   ;;  %v956_v35 = vld [vmem:[%s1788_s5] ss:$0 sm:$0xff] }
  0xc5   : > { %1041 = vmatprep.subr.bf16.mxu0 %v1424_v0  ;;  %1061 = vmatprep.subr.bf16.mxu1 %v1424_v0  ;;  %v1192_v34 = vld [vmem:[#allocation10 + $0x38] sm:$0xff]   ;;  %v965_v36 = vld [vmem:[%s1789_s6] ss:$0 sm:$0xff]  ;;  %p1347_p6 = pnand %p1346_p0, %p1340_p4 }
  0xc6   : > { %v974_v50 = vld [vmem:[%s1790_s7] ss:$0 sm:$0xff] }
  0xc8   : > { %1042 = vmatpush3.bf16.msra.mxu0 %v1167_v7  ;;  %1062 = vmatpush3.bf16.msra.mxu1 %v1168_v8 }
  0xc9   : > { %1043 = vmatprep.subr.bf16.mxu0 %v1424_v0  ;;  %1063 = vmatprep.subr.bf16.mxu1 %v1424_v0 }
  0xcc   : > { %1044 = vmatpush3.bf16.msra.mxu0 %v1169_v9  ;;  %1064 = vmatpush3.bf16.msra.mxu1 %v1170_v10 }
  0xcd   : > { %1045 = vmatprep.subr.bf16.mxu0 %v1424_v0  ;;  %1065 = vmatprep.subr.bf16.mxu1 %v1424_v0 }
  0xd0   : > { %1046 = vmatpush3.bf16.msra.mxu0 %v1171_v11  ;;  %1066 = vmatpush3.bf16.msra.mxu1 %v1172_v12 }
  0xd1   : > { %1047 = vmatprep.subr.bf16.mxu0 %v1424_v0  ;;  %1067 = vmatprep.subr.bf16.mxu1 %v1424_v0 }
  0xd4   : > { %1048 = vmatpush3.bf16.msra.mxu0 %v1173_v13  ;;  %1068 = vmatpush3.bf16.msra.mxu1 %v1174_v14 }
  0xd5   : > { %1049 = vmatprep.subr.bf16.mxu0 %v1424_v0  ;;  %1069 = vmatprep.subr.bf16.mxu1 %v1424_v0 }
  0xd8   : > { %1050 = vmatpush3.bf16.msra.mxu0 %v1175_v15  ;;  %1070 = vmatpush3.bf16.msra.mxu1 %v1176_v16 }
  0xd9   : > { %1013 = vmatprep.subr.bf16.mxu0 %v1177_v17 }
  0xdb   : > { %1052 = vmatmul.mubr.bf16.vlgmr.msra.gmra.mrb[0].mxu0 %v402_v18  ;;  %1072 = vmatmul.mubr.bf16.vlgmr.msra.gmra.mrb[0].mxu1 %v514_v19 }
  0xdc   : > { %1014 = vmatpush3.bf16.msra.mxu0 %v1178_v20 }
  0xdd   : > { %1015 = vmatprep.subr.bf16.mxu0 %v1179_v21 }
  0xe0   : > { %1016 = vmatpush3.bf16.msra.mxu0 %v1180_v22 }
  0xe1   : > { %1017 = vmatprep.subr.bf16.mxu0 %v1181_v23 }
  0xe4   : > { %1018 = vmatpush3.bf16.msra.mxu0 %v1182_v24 }
  0xe5   : > { %1019 = vmatprep.subr.bf16.mxu0 %v1183_v25 }
  0xe8   : > { %1020 = vmatpush3.bf16.msra.mxu0 %v1184_v26 }
  0xe9   : > { %1021 = vmatprep.subr.bf16.mxu0 %v1185_v27 }
  0xec   : > { %1022 = vmatpush3.bf16.msra.mxu0 %v1186_v28 }
  0xed   : > { %1023 = vmatprep.subr.bf16.mxu0 %v1187_v29 }
  0xf0   : > { %1024 = vmatpush3.bf16.msra.mxu0 %v1188_v30 }
  0xf1   : > { %1025 = vmatprep.subr.bf16.mxu0 %v1189_v31 }
  0xf4   : > { %1026 = vmatpush3.bf16.msra.mxu0 %v1190_v32 }
  0xf5   : > { %1027 = vmatprep.subr.bf16.mxu0 %v1191_v33 }
  0xf8   : > { %1028 = vmatpush3.bf16.msra.mxu0 %v1192_v34 }
 0x1ae   : > { %v508_v37 = vpop.f32.mrb[0].mxu0  ;;  %v620_v39 = vpop.f32.mrb[0].mxu1 }
 0x1af   : > { %v509_v38 = vadd.f32 %v956_v35, %v508_v37  ;;  %v1053_v40 = vpop.f32.mrb[1].mxu0  ;;  %v621_v41 = vadd.f32 %v965_v36, %v620_v39  ;;  %v1073_v42 = vpop.f32.mrb[1].mxu1 }
 0x1b0   : > { %v511_v43 = vpop.f32.mrb[2].mxu0  ;;  %v623_v45 = vpop.f32.mrb[2].mxu1 }
 0x1b1   : > { %v626_v44 = vpack.c.bf16 %v509_v38, %v509_v38  ;;  %v1054_v46 = vpop.f32.mrb[3].mxu0  ;;  %v627_v47 = vpack.c.bf16 %v621_v41, %v621_v41  ;;  %v1074_v48 = vpop.f32.mrb[3].mxu1 }
 0x1b3   : > { %795 = vmatprep.mubr.bf16.mxu0 %v627_v47 }
 0x1b4   : > { %796 = vmatmul.mubr.bf16.vlgmr.msra.gmra.mrb[4].mxu0 %v626_v44 }
 0x287   : > { %v1029_v49 = vpop.f32.mrb[4].mxu0 }
 0x288   : > { %v1030_v51 = vpop.f32.mrb[5].mxu0 }
 0x289   : > { %v1031_v52 = vadd.f32 %v1030_v51, %v1029_v49  ;;  %v1032_v53 = vpop.f32.mrb[6].mxu0 }
 0x28a   : > { %v1033_v54 = vpop.f32.mrb[7].mxu0 }
 0x28b   : > { %v798_v55 = vadd.f32 %v1031_v52, %v974_v50 }
 0x28d   : > { %803 = vst [vmem:[%s400_s10] sm:$0xff] %v798_v55 }
 0x28e   : > { %1350 = shalt.err (!%p1347_p6)
}
 0x28f   : > { %s1351_s2 = scalar_lea.hbm %s1740_s21, 128  ;;  %s1355_s19 = scalar_lea.hbm %s1791_s8, 512 }
 0x290   : > { %p1352_p12 = scmp.ne.s32.totalorder %s1740_s21, %s1351_s2  ;;  %p1356_p9 = scmp.lt.u32.totalorder %s1740_s21, %s1791_s8 }
 0x291   : > { %p1357_p3 = scmp.lt.u32.totalorder %s1355_s19, %s1351_s2  ;;  %p1359_p11 = scmp.lt.u32.totalorder %s1351_s2, %s1740_s21 }
 0x292   : > { %p1353_p5 = pnand %p1352_p12, %p1820_p1 }
 0x293   : > { %p1358_p7 = por %p1357_p3, %p1356_p9 }
 0x294   : > { %p1354_p10 = pneg %p1353_p5 }
 0x295   : > { %p1360_p2 = por %p1359_p11, %p1358_p7 }
 0x297   : > { %p1361_p4 = pnand %p1360_p2, %p1354_p10 }
 0x299   : > { %1364 = shalt.err (!%p1361_p4)
}
 0x29a   : > { %1091 = dma.vmem_to_hbm [thread:$0]  (%p1820_p1), %s1742_s17, 128, %s1740_s21, %s805_s14  }
 0x29b PF: > { %s1821_s18 = sld [smem:[#allocation17_spill]]  ;;  %s1822_s3 = sld [smem:[#allocation18_spill]] }
 0x29c   : > { %p1121_p13 = scmp.ge.s32.totalorder %s1415_s30, 2 }
 0x2a1   : > { %s830_s20 = sand.u32 1, %s1821_s18   ;;  %p1823_p8 = scmp.ne.s32.totalorder %s1822_s3, 0 }
 0x2a2   : > { %s831_s10 = scalar_lea.sflag [#allocation4], %s830_s20 }
 0x2a3   : > { %p1111_p0 = pnand %p1121_p13, %p1823_p8 }
 0x2a5   : > { %1398 = dma.done.wait (!%p1111_p0), %s831_s10, 128  }
 0x2a6   : > { %1400 = vsyncadd (!%p1111_p0), %s831_s10, 4294967168  ;;  %p25_p6 = scmp.ge.s32.totalorder %s1611_s26, 6   ;;  %s1824_s27 = smov %s1407_s28 }
 0x2a7   : > { %s1825_s28 = smov %s1411_s29  ;;  %s1826_s29 = smov %s1621_s22 }
 0x2a8   : > { %s1827_s30 = smov %s1611_s26  ;;  %27 = sbr.rel (!%p25_p6) target bundleno = 12 (0xc), region = 122 }
 0x2af   :  { %836 = vsyncpa [#allocation3], 1 }
 0x2b0   :  { %838 = vsyncpa [#allocation3 + $0x1], 1 }
 0x2b1   :  { %839 = vsyncpa [#allocation6], 1 }
 0x2b2   :  { %841 = vsyncpa [#allocation6 + $0x1], 1 }
 0x2b3   :  { %842 = vsyncpa [#allocation9], 1 }
 0x2b4   :  { %843 = vsyncpa [#allocation4], 1 }
 0x2b5   :  { %845 = vsyncpa [#allocation4 + $0x1], 1 }

</bundles_post_ra>
